<compile_context>
chip_gen: v7x
topology: tpu7x:2x2x1
jax: 0.10.0
libtpu: 0.0.40
codegen_flags: <defaults>
</compile_context>

<pallas_src>
import functools

import jax
import jax.numpy as jnp
import numpy as np
from jax.experimental import pallas as pl
from jax.experimental.pallas import tpu as pltpu


# ----------------------------------------------------------------------------
# Kernels
# ----------------------------------------------------------------------------
def _sage_accumulate(adj_ref, hk_ref, acc_ref):
    """acc += (int8 adj tile as bf16) @ h_tile, init at the first K step."""
    @pl.when(pl.program_id(1) == 0)
    def _():
        acc_ref[...] = jnp.zeros_like(acc_ref)

    acc_ref[...] += jnp.dot(adj_ref[...].astype(jnp.bfloat16), hk_ref[...],
                            preferred_element_type=jnp.float32)


def _sage_finalize(acc_ref, dinv_ref, hi_ref, wl_ref, wr_ref, b_ref):
    """relu( (acc * 1/deg) @ W_l + x_self @ W_r + b ), fp32 math, two MXU dots."""
    agg = (acc_ref[...] * dinv_ref[...]).astype(jnp.bfloat16)
    h = (jnp.dot(agg, wl_ref[...], preferred_element_type=jnp.float32)
         + jnp.dot(hi_ref[...], wr_ref[...], preferred_element_type=jnp.float32)
         + b_ref[...])
    return jnp.maximum(h, 0.0)


def sage_hidden_kernel(adj_ref, hk_ref, hi_ref, dinv_ref, wl_ref, wr_ref, b_ref,
                       out_ref, acc_ref):
    """One SAGEConv layer + ReLU, bf16 output (feeds the next layer)."""
    _sage_accumulate(adj_ref, hk_ref, acc_ref)

    @pl.when(pl.program_id(1) == pl.num_programs(1) - 1)
    def _():
        out_ref[...] = _sage_finalize(acc_ref, dinv_ref, hi_ref, wl_ref, wr_ref,
                                      b_ref).astype(out_ref.dtype)


def sage_fc_kernel(adj_ref, hk_ref, hi_ref, dinv_ref, wl_ref, wr_ref, b_ref,
                   wfc_ref, bfc_ref, out_ref, acc_ref):
    """Second SAGEConv layer + ReLU with the final fc fused into the epilogue."""
    _sage_accumulate(adj_ref, hk_ref, acc_ref)

    @pl.when(pl.program_id(1) == pl.num_programs(1) - 1)
    def _():
        h2 = _sage_finalize(acc_ref, dinv_ref, hi_ref, wl_ref, wr_ref,
                            b_ref).astype(jnp.bfloat16)
        out_ref[...] = (jnp.dot(h2, wfc_ref[...], preferred_element_type=jnp.float32)
                        + bfc_ref[...])


# ----------------------------------------------------------------------------
# Wrapper glue
# ----------------------------------------------------------------------------
def _round_up(a, b):
    return (a + b - 1) // b * b


def _pad2(a, rows, cols):
    return jnp.pad(a, ((0, rows - a.shape[0]), (0, cols - a.shape[1])))


def _pow2_tile(limit, n):
    """Largest 128 * 2^k tile <= min(limit, n)."""
    t = 128
    while t * 2 <= min(limit, n):
        t *= 2
    return t


def plan_tiles(num_nodes, tile_m=2048, tile_k=512):
    """Pick (n_pad, TM, TK).  TM, TK are 128*2^k with TK <= TM, so TK | TM and
    both divide n_pad.  TM is capped at ~n_pad/2 so v7x's two TCs both get row
    tiles whenever the graph is big enough."""
    n0 = _round_up(max(num_nodes, 1), 128)
    tm = _pow2_tile(tile_m, max(n0 // 2, 128))
    tk = _pow2_tile(tile_k, tm)
    n_pad = _round_up(n0, tm)
    return n_pad, tm, tk


def precompute_graph(edge_index, num_nodes, n_pad):
    """Build ONCE per static graph: int8 edge-count matrix + fp32 1/deg column.

    A_counts[i, j] = #edges j -> i ; deg_inv[i] = 1 / max(sum_j A_counts[i, j], 1).
    mean-aggregation == deg_inv * (A_counts @ H), computed exactly in fp32.
    """
    del num_nodes  # edges already index real nodes < num_nodes <= n_pad
    src = edge_index[0]
    dst = edge_index[1]
    counts = jnp.zeros((n_pad, n_pad), jnp.int32).at[dst, src].add(1)
    deg = jnp.sum(counts, axis=1, keepdims=True).astype(jnp.float32)
    deg_inv = 1.0 / jnp.maximum(deg, 1.0)
    return counts.astype(jnp.int8), deg_inv


def _sage_layer_call(adj, deg_inv, h_nbr, h_self, wl, wr, bias, out_dtype,
                     out_feats, *, tm, tk, wfc=None, bfc=None):
    """Tiled pallas_call for one SAGE layer (optionally with fused fc epilogue)."""
    n_pad = adj.shape[0]
    f_in = h_nbr.shape[1]
    grid = (n_pad // tm, n_pad // tk)

    in_specs = [
        pl.BlockSpec((tm, tk), lambda i, k: (i, k)),      # int8 adjacency counts
        pl.BlockSpec((tk, f_in), lambda i, k: (k, 0)),    # neighbor features (K)
        pl.BlockSpec((tm, f_in), lambda i, k: (i, 0)),    # self features (rows)
        pl.BlockSpec((tm, 1), lambda i, k: (i, 0)),       # fp32 1/deg per row
        pl.BlockSpec(wl.shape, lambda i, k: (0, 0)),      # W_l
        pl.BlockSpec(wr.shape, lambda i, k: (0, 0)),      # W_r
        pl.BlockSpec(bias.shape, lambda i, k: (0, 0)),    # bias (1, H)
    ]
    inputs = [adj, h_nbr, h_self, deg_inv, wl, wr, bias]
    if wfc is not None:
        in_specs += [pl.BlockSpec(wfc.shape, lambda i, k: (0, 0)),
                     pl.BlockSpec(bfc.shape, lambda i, k: (0, 0))]
        inputs += [wfc, bfc]
        kernel = sage_fc_kernel
    else:
        kernel = sage_hidden_kernel

    # Rough cost hint for the XLA scheduler (HBM-bound on the adjacency stream).
    hidden_out = wl.shape[1]
    flops = 2 * n_pad * n_pad * f_in + 4 * n_pad * f_in * hidden_out
    bytes_accessed = (adj.size                                  # int8: 1 B/elem
                      + grid[0] * h_nbr.size * 2                # re-streamed per row tile
                      + h_self.size * 2
                      + deg_inv.size * 4
                      + (wl.size + wr.size) * 2
                      + n_pad * out_feats * jnp.dtype(out_dtype).itemsize)
    if wfc is not None:
        flops += 2 * n_pad * wfc.shape[0] * wfc.shape[1]
        bytes_accessed += wfc.size * 2
    cost = pl.CostEstimate(flops=int(flops), transcendentals=0,
                           bytes_accessed=int(bytes_accessed))

    grid_spec = pltpu.PrefetchScalarGridSpec(
        num_scalar_prefetch=0,
        grid=grid,
        in_specs=in_specs,
        out_specs=pl.BlockSpec((tm, out_feats), lambda i, k: (i, 0)),
        scratch_shapes=[pltpu.VMEM((tm, f_in), jnp.float32)],
    )
    return pl.pallas_call(
        kernel,
        out_shape=jax.ShapeDtypeStruct((n_pad, out_feats), out_dtype),
        grid_spec=grid_spec,
        compiler_params=pltpu.CompilerParams(
            dimension_semantics=("parallel", "arbitrary"),
            # Enlarged TM/TK need > v5e's 16 MiB default scoped-VMEM limit;
            # 48 MiB stays inside every generation's physical VMEM.
            vmem_limit_bytes=48 * 1024 * 1024),
        cost_estimate=cost,
    )(*inputs)


@functools.partial(jax.jit, static_argnames=("tm", "tk"))
def household_assignment_gnn(x, adj_i8, deg_inv, params, *, tm, tk):
    """Forward pass.  `adj_i8`/`deg_inv` come from precompute_graph (hoisted out
    of the hot path); `tm`/`tk` from plan_tiles."""
    num_nodes, in_channels = x.shape
    hidden = params["conv1_lin_l_w"].shape[0]
    num_households = params["fc_w"].shape[0]
    n_pad = adj_i8.shape[0]

    # Lane-dense padded dims.
    f_pad = _round_up(in_channels, 128)
    h_pad = _round_up(hidden, 128)
    nh_pad = _round_up(num_households, 128)

    xp = _pad2(x, n_pad, f_pad).astype(jnp.bfloat16)

    # bf16 weights (W stored as (out, in) in torch; transpose to (in, out)).
    w1l = _pad2(params["conv1_lin_l_w"].T, f_pad, h_pad).astype(jnp.bfloat16)
    w1r = _pad2(params["conv1_lin_r_w"].T, f_pad, h_pad).astype(jnp.bfloat16)
    b1 = _pad2(params["conv1_lin_l_b"].reshape(1, -1), 1, h_pad)
    w2l = _pad2(params["conv3_lin_l_w"].T, h_pad, h_pad).astype(jnp.bfloat16)
    w2r = _pad2(params["conv3_lin_r_w"].T, h_pad, h_pad).astype(jnp.bfloat16)
    b2 = _pad2(params["conv3_lin_l_b"].reshape(1, -1), 1, h_pad)
    wfc = _pad2(params["fc_w"].T, h_pad, nh_pad).astype(jnp.bfloat16)
    bfc = _pad2(params["fc_b"].reshape(1, -1), 1, nh_pad)

    # Layer 1: SAGEConv + ReLU (bf16 hidden state).
    h1 = _sage_layer_call(adj_i8, deg_inv, xp, xp, w1l, w1r, b1,
                          jnp.bfloat16, h_pad, tm=tm, tk=tk)
    # Layer 2: SAGEConv + ReLU with fc fused into the epilogue (fp32 logits).
    logits = _sage_layer_call(adj_i8, deg_inv, h1, h1, w2l, w2r, b2,
                              jnp.float32, nh_pad, tm=tm, tk=tk,
                              wfc=wfc, bfc=bfc)
    return logits[:num_nodes, :num_households]


# ----------------------------------------------------------------------------
# Pure-JAX reference (fp32) for validation
# ----------------------------------------------------------------------------
def reference_forward(x, edge_index, params):
    n = x.shape[0]
    src, dst = edge_index[0], edge_index[1]
    adj = jnp.zeros((n, n), jnp.float32).at[dst, src].add(1.0)
    adj = adj / jnp.maximum(jnp.sum(adj, axis=1, keepdims=True), 1.0)

    def sage(h, wl, bl, wr):
        return (adj @ h) @ wl.T + bl + h @ wr.T

    h1 = jax.nn.relu(sage(x, params["conv1_lin_l_w"], params["conv1_lin_l_b"],
                          params["conv1_lin_r_w"]))
    h2 = jax.nn.relu(sage(h1, params["conv3_lin_l_w"], params["conv3_lin_l_b"],
                          params["conv3_lin_r_w"]))
    return h2 @ params["fc_w"].T + params["fc_b"]


def init_params(key, in_channels, hidden_channels, num_households):
    ks = jax.random.split(key, 8)
    s = 0.1
    return {
        "conv1_lin_l_w": s * jax.random.normal(ks[0], (hidden_channels, in_channels), jnp.float32),
        "conv1_lin_l_b": s * jax.random.normal(ks[1], (hidden_channels,), jnp.float32),
        "conv1_lin_r_w": s * jax.random.normal(ks[2], (hidden_channels, in_channels), jnp.float32),
        "conv3_lin_l_w": s * jax.random.normal(ks[3], (hidden_channels, hidden_channels), jnp.float32),
        "conv3_lin_l_b": s * jax.random.normal(ks[4], (hidden_channels,), jnp.float32),
        "conv3_lin_r_w": s * jax.random.normal(ks[5], (hidden_channels, hidden_channels), jnp.float32),
        "fc_w": s * jax.random.normal(ks[6], (num_households, hidden_channels), jnp.float32),
        "fc_b": s * jax.random.normal(ks[7], (num_households,), jnp.float32),
    }


if __name__ == "__main__":
    num_nodes = 16          # person nodes
    in_channels = 8
    hidden_channels = 32
    num_households = 16
    num_edges = 32

    key = jax.random.PRNGKey(0)
    k_x, k_src, k_dst, k_params = jax.random.split(key, 4)

    x = jax.random.normal(k_x, (num_nodes, in_channels), jnp.float32)
    edge_index = jnp.stack([
        jax.random.randint(k_src, (num_edges,), 0, num_nodes),
        jax.random.randint(k_dst, (num_edges,), 0, num_nodes),
    ], axis=0).astype(jnp.int32)

    params = init_params(k_params, in_channels, hidden_channels, num_households)

    # Graph preprocessing hoisted out of the forward path (static graph).
    n_pad, tm, tk = plan_tiles(num_nodes)
    adj_i8, deg_inv = precompute_graph(edge_index, num_nodes, n_pad)
    adj_i8, deg_inv = jax.block_until_ready((adj_i8, deg_inv))

    out = household_assignment_gnn(x, adj_i8, deg_inv, params, tm=tm, tk=tk)
    out = jax.block_until_ready(out)

    ref = jax.block_until_ready(reference_forward(x, edge_index, params))
    assert out.shape == (num_nodes, num_households)
    # bf16 features/weights with fp32 accumulation and exact fp32 1/deg scaling
    # keep the error at the ~1e-3 level for these scales.
    np.testing.assert_allclose(np.asarray(out), np.asarray(ref), rtol=2e-2, atol=2e-2)

    print("KERNEL_OK")
</pallas_src>

<mosaic_0001>
module attributes {stable_mosaic.version = 11 : i64} {
  func.func @sage_hidden_kernel(%arg0: i32, %arg1: i32, %arg2: memref<128x128xi8, #tpu.memory_space<vmem>>, %arg3: memref<128x128xbf16, #tpu.memory_space<vmem>>, %arg4: memref<128x128xbf16, #tpu.memory_space<vmem>>, %arg5: memref<128x1xf32, #tpu.memory_space<vmem>>, %arg6: memref<128x128xbf16, #tpu.memory_space<vmem>>, %arg7: memref<128x128xbf16, #tpu.memory_space<vmem>>, %arg8: memref<1x128xf32, #tpu.memory_space<vmem>>, %arg9: memref<128x128xbf16, #tpu.memory_space<vmem>>, %arg10: memref<128x128xf32, #tpu.memory_space<vmem>>) attributes {dimension_semantics = [#tpu.dimension_semantics<parallel>, #tpu.dimension_semantics<arbitrary>], iteration_bounds = array<i64: 1, 1>, scalar_prefetch = 0 : i64, scratch_operands = 1 : i64, tpu.core_type = #tpu.core_type<tc>, window_params = [{transform_indices = @transform_0, window_bounds = array<i64: 128, 128>}, {transform_indices = @transform_1, window_bounds = array<i64: 128, 128>}, {transform_indices = @transform_2, window_bounds = array<i64: 128, 128>}, {transform_indices = @transform_3, window_bounds = array<i64: 128, 1>}, {pipeline_mode = #tpu.pipeline_mode<synchronous>, transform_indices = @transform_4, window_bounds = array<i64: 128, 128>}, {pipeline_mode = #tpu.pipeline_mode<synchronous>, transform_indices = @transform_5, window_bounds = array<i64: 128, 128>}, {pipeline_mode = #tpu.pipeline_mode<synchronous>, transform_indices = @transform_6, window_bounds = array<i64: 1, 128>}, {transform_indices = @transform_7, window_bounds = array<i64: 128, 128>}]} {
    %c0_i32 = arith.constant 0 : i32
    %0 = arith.cmpi eq, %arg1, %c0_i32 : i32
    %1 = arith.extui %0 : i1 to i32
    %c0_i32_0 = arith.constant 0 : i32
    %2 = arith.cmpi ne, %1, %c0_i32_0 : i32
    scf.if %2 {
      %cst_10 = arith.constant 0.000000e+00 : f32
      %13 = vector.broadcast %cst_10 : f32 to vector<128x128xf32>
      %c0_11 = arith.constant 0 : index
      %c0_12 = arith.constant 0 : index
      %14 = vector.load %arg10[%c0_11, %c0_12] : memref<128x128xf32, #tpu.memory_space<vmem>>, vector<128x128xf32>
      tpu.vector_store %arg10[%c0_11, %c0_12], %13 {strides = array<i32>} : memref<128x128xf32, #tpu.memory_space<vmem>>, vector<128x128xf32>,
    } else {
    }
    %c0 = arith.constant 0 : index
    %c0_1 = arith.constant 0 : index
    %3 = vector.load %arg10[%c0, %c0_1] : memref<128x128xf32, #tpu.memory_space<vmem>>, vector<128x128xf32>
    %c0_2 = arith.constant 0 : index
    %c0_3 = arith.constant 0 : index
    %4 = vector.load %arg2[%c0_2, %c0_3] : memref<128x128xi8, #tpu.memory_space<vmem>>, vector<128x128xi8>
    %5 = arith.sitofp %4 : vector<128x128xi8> to vector<128x128xbf16>
    %c0_4 = arith.constant 0 : index
    %c0_5 = arith.constant 0 : index
    %6 = vector.load %arg3[%c0_4, %c0_5] : memref<128x128xbf16, #tpu.memory_space<vmem>>, vector<128x128xbf16>
    %cst = arith.constant dense<0.000000e+00> : vector<128x128xf32>
    %7 = tpu.matmul %5, %6, %cst {dimension_numbers = #tpu.dot_dimension_numbers<[1], [0], [0], [1], [0, 0, 1, 1], [], []>} : vector<128x128xbf16>, vector<128x128xbf16>, vector<128x128xf32> -> vector<128x128xf32>
    %8 = arith.addf %3, %7 : vector<128x128xf32>
    %c0_6 = arith.constant 0 : index
    %c0_7 = arith.constant 0 : index
    %9 = vector.load %arg10[%c0_6, %c0_7] : memref<128x128xf32, #tpu.memory_space<vmem>>, vector<128x128xf32>
    tpu.vector_store %arg10[%c0_6, %c0_7], %8 {strides = array<i32>} : memref<128x128xf32, #tpu.memory_space<vmem>>, vector<128x128xf32>,
    %c0_i32_8 = arith.constant 0 : i32
    %10 = arith.cmpi eq, %arg1, %c0_i32_8 : i32
    %11 = arith.extui %10 : i1 to i32
    %c0_i32_9 = arith.constant 0 : i32
    %12 = arith.cmpi ne, %11, %c0_i32_9 : i32
    scf.if %12 {
      %c0_10 = arith.constant 0 : index
      %c0_11 = arith.constant 0 : index
      %13 = vector.load %arg10[%c0_10, %c0_11] : memref<128x128xf32, #tpu.memory_space<vmem>>, vector<128x128xf32>
      %c0_12 = arith.constant 0 : index
      %c0_13 = arith.constant 0 : index
      %14 = vector.load %arg5[%c0_12, %c0_13] : memref<128x1xf32, #tpu.memory_space<vmem>>, vector<128x1xf32>
      %15 = vector.broadcast %14 : vector<128x1xf32> to vector<128x128xf32>
      %16 = arith.mulf %13, %15 : vector<128x128xf32>
      %17 = arith.truncf %16 : vector<128x128xf32> to vector<128x128xbf16>
      %c0_14 = arith.constant 0 : index
      %c0_15 = arith.constant 0 : index
      %18 = vector.load %arg6[%c0_14, %c0_15] : memref<128x128xbf16, #tpu.memory_space<vmem>>, vector<128x128xbf16>
      %cst_16 = arith.constant dense<0.000000e+00> : vector<128x128xf32>
      %19 = tpu.matmul %17, %18, %cst_16 {dimension_numbers = #tpu.dot_dimension_numbers<[1], [0], [0], [1], [0, 0, 1, 1], [], []>} : vector<128x128xbf16>, vector<128x128xbf16>, vector<128x128xf32> -> vector<128x128xf32>
      %c0_17 = arith.constant 0 : index
      %c0_18 = arith.constant 0 : index
      %20 = vector.load %arg4[%c0_17, %c0_18] : memref<128x128xbf16, #tpu.memory_space<vmem>>, vector<128x128xbf16>
      %c0_19 = arith.constant 0 : index
      %c0_20 = arith.constant 0 : index
      %21 = vector.load %arg7[%c0_19, %c0_20] : memref<128x128xbf16, #tpu.memory_space<vmem>>, vector<128x128xbf16>
      %cst_21 = arith.constant dense<0.000000e+00> : vector<128x128xf32>
      %22 = tpu.matmul %20, %21, %cst_21 {dimension_numbers = #tpu.dot_dimension_numbers<[1], [0], [0], [1], [0, 0, 1, 1], [], []>} : vector<128x128xbf16>, vector<128x128xbf16>, vector<128x128xf32> -> vector<128x128xf32>
      %23 = arith.addf %19, %22 : vector<128x128xf32>
      %c0_22 = arith.constant 0 : index
      %c0_23 = arith.constant 0 : index
      %24 = vector.load %arg8[%c0_22, %c0_23] : memref<1x128xf32, #tpu.memory_space<vmem>>, vector<1x128xf32>
      %25 = vector.broadcast %24 : vector<1x128xf32> to vector<128x128xf32>
      %26 = arith.addf %23, %25 : vector<128x128xf32>
      %cst_24 = arith.constant 0.000000e+00 : f32
      %27 = vector.broadcast %cst_24 : f32 to vector<128x128xf32>
      %28 = arith.maximumf %26, %27 : vector<128x128xf32>
      %29 = arith.truncf %28 : vector<128x128xf32> to vector<128x128xbf16>
      %c0_25 = arith.constant 0 : index
      %c0_26 = arith.constant 0 : index
      %30 = vector.load %arg9[%c0_25, %c0_26] : memref<128x128xbf16, #tpu.memory_space<vmem>>, vector<128x128xbf16>
      tpu.vector_store %arg9[%c0_25, %c0_26], %29 {strides = array<i32>} : memref<128x128xbf16, #tpu.memory_space<vmem>>, vector<128x128xbf16>,
    } else {
    }
    return
  }
  func.func @transform_0(%arg0: i32, %arg1: i32) -> (i32, i32) {
    %c0_i32 = arith.constant 0 : i32
    return %arg0, %arg1 : i32, i32
  }
  func.func @transform_1(%arg0: i32, %arg1: i32) -> (i32, i32) {
    %c0_i32 = arith.constant 0 : i32
    %c0_i32_0 = arith.constant 0 : i32
    return %arg1, %c0_i32 : i32, i32
  }
  func.func @transform_2(%arg0: i32, %arg1: i32) -> (i32, i32) {
    %c0_i32 = arith.constant 0 : i32
    %c0_i32_0 = arith.constant 0 : i32
    return %arg0, %c0_i32 : i32, i32
  }
  func.func @transform_3(%arg0: i32, %arg1: i32) -> (i32, i32) {
    %c0_i32 = arith.constant 0 : i32
    %c0_i32_0 = arith.constant 0 : i32
    return %arg0, %c0_i32 : i32, i32
  }
  func.func @transform_4(%arg0: i32, %arg1: i32) -> (i32, i32) {
    %c0_i32 = arith.constant 0 : i32
    %c0_i32_0 = arith.constant 0 : i32
    %c0_i32_1 = arith.constant 0 : i32
    return %c0_i32, %c0_i32_0 : i32, i32
  }
  func.func @transform_5(%arg0: i32, %arg1: i32) -> (i32, i32) {
    %c0_i32 = arith.constant 0 : i32
    %c0_i32_0 = arith.constant 0 : i32
    %c0_i32_1 = arith.constant 0 : i32
    return %c0_i32, %c0_i32_0 : i32, i32
  }
  func.func @transform_6(%arg0: i32, %arg1: i32) -> (i32, i32) {
    %c0_i32 = arith.constant 0 : i32
    %c0_i32_0 = arith.constant 0 : i32
    %c0_i32_1 = arith.constant 0 : i32
    return %c0_i32, %c0_i32_0 : i32, i32
  }
  func.func @transform_7(%arg0: i32, %arg1: i32) -> (i32, i32) {
    %c0_i32 = arith.constant 0 : i32
    %c0_i32_0 = arith.constant 0 : i32
    return %arg0, %c0_i32 : i32, i32
  }
}

module attributes {stable_mosaic.version = 11 : i64} {
  func.func @sage_fc_kernel(%arg0: i32, %arg1: i32, %arg2: memref<128x128xi8, #tpu.memory_space<vmem>>, %arg3: memref<128x128xbf16, #tpu.memory_space<vmem>>, %arg4: memref<128x128xbf16, #tpu.memory_space<vmem>>, %arg5: memref<128x1xf32, #tpu.memory_space<vmem>>, %arg6: memref<128x128xbf16, #tpu.memory_space<vmem>>, %arg7: memref<128x128xbf16, #tpu.memory_space<vmem>>, %arg8: memref<1x128xf32, #tpu.memory_space<vmem>>, %arg9: memref<128x128xbf16, #tpu.memory_space<vmem>>, %arg10: memref<1x128xf32, #tpu.memory_space<vmem>>, %arg11: memref<128x128xf32, #tpu.memory_space<vmem>>, %arg12: memref<128x128xf32, #tpu.memory_space<vmem>>) attributes {dimension_semantics = [#tpu.dimension_semantics<parallel>, #tpu.dimension_semantics<arbitrary>], iteration_bounds = array<i64: 1, 1>, scalar_prefetch = 0 : i64, scratch_operands = 1 : i64, tpu.core_type = #tpu.core_type<tc>, window_params = [{transform_indices = @transform_0, window_bounds = array<i64: 128, 128>}, {transform_indices = @transform_1, window_bounds = array<i64: 128, 128>}, {transform_indices = @transform_2, window_bounds = array<i64: 128, 128>}, {transform_indices = @transform_3, window_bounds = array<i64: 128, 1>}, {pipeline_mode = #tpu.pipeline_mode<synchronous>, transform_indices = @transform_4, window_bounds = array<i64: 128, 128>}, {pipeline_mode = #tpu.pipeline_mode<synchronous>, transform_indices = @transform_5, window_bounds = array<i64: 128, 128>}, {pipeline_mode = #tpu.pipeline_mode<synchronous>, transform_indices = @transform_6, window_bounds = array<i64: 1, 128>}, {pipeline_mode = #tpu.pipeline_mode<synchronous>, transform_indices = @transform_7, window_bounds = array<i64: 128, 128>}, {pipeline_mode = #tpu.pipeline_mode<synchronous>, transform_indices = @transform_8, window_bounds = array<i64: 1, 128>}, {transform_indices = @transform_9, window_bounds = array<i64: 128, 128>}]} {
    %c0_i32 = arith.constant 0 : i32
    %0 = arith.cmpi eq, %arg1, %c0_i32 : i32
    %1 = arith.extui %0 : i1 to i32
    %c0_i32_0 = arith.constant 0 : i32
    %2 = arith.cmpi ne, %1, %c0_i32_0 : i32
    scf.if %2 {
      %cst_10 = arith.constant 0.000000e+00 : f32
      %13 = vector.broadcast %cst_10 : f32 to vector<128x128xf32>
      %c0_11 = arith.constant 0 : index
      %c0_12 = arith.constant 0 : index
      %14 = vector.load %arg12[%c0_11, %c0_12] : memref<128x128xf32, #tpu.memory_space<vmem>>, vector<128x128xf32>
      tpu.vector_store %arg12[%c0_11, %c0_12], %13 {strides = array<i32>} : memref<128x128xf32, #tpu.memory_space<vmem>>, vector<128x128xf32>,
    } else {
    }
    %c0 = arith.constant 0 : index
    %c0_1 = arith.constant 0 : index
    %3 = vector.load %arg12[%c0, %c0_1] : memref<128x128xf32, #tpu.memory_space<vmem>>, vector<128x128xf32>
    %c0_2 = arith.constant 0 : index
    %c0_3 = arith.constant 0 : index
    %4 = vector.load %arg2[%c0_2, %c0_3] : memref<128x128xi8, #tpu.memory_space<vmem>>, vector<128x128xi8>
    %5 = arith.sitofp %4 : vector<128x128xi8> to vector<128x128xbf16>
    %c0_4 = arith.constant 0 : index
    %c0_5 = arith.constant 0 : index
    %6 = vector.load %arg3[%c0_4, %c0_5] : memref<128x128xbf16, #tpu.memory_space<vmem>>, vector<128x128xbf16>
    %cst = arith.constant dense<0.000000e+00> : vector<128x128xf32>
    %7 = tpu.matmul %5, %6, %cst {dimension_numbers = #tpu.dot_dimension_numbers<[1], [0], [0], [1], [0, 0, 1, 1], [], []>} : vector<128x128xbf16>, vector<128x128xbf16>, vector<128x128xf32> -> vector<128x128xf32>
    %8 = arith.addf %3, %7 : vector<128x128xf32>
    %c0_6 = arith.constant 0 : index
    %c0_7 = arith.constant 0 : index
    %9 = vector.load %arg12[%c0_6, %c0_7] : memref<128x128xf32, #tpu.memory_space<vmem>>, vector<128x128xf32>
    tpu.vector_store %arg12[%c0_6, %c0_7], %8 {strides = array<i32>} : memref<128x128xf32, #tpu.memory_space<vmem>>, vector<128x128xf32>,
    %c0_i32_8 = arith.constant 0 : i32
    %10 = arith.cmpi eq, %arg1, %c0_i32_8 : i32
    %11 = arith.extui %10 : i1 to i32
    %c0_i32_9 = arith.constant 0 : i32
    %12 = arith.cmpi ne, %11, %c0_i32_9 : i32
    scf.if %12 {
      %c0_10 = arith.constant 0 : index
      %c0_11 = arith.constant 0 : index
      %13 = vector.load %arg12[%c0_10, %c0_11] : memref<128x128xf32, #tpu.memory_space<vmem>>, vector<128x128xf32>
      %c0_12 = arith.constant 0 : index
      %c0_13 = arith.constant 0 : index
      %14 = vector.load %arg5[%c0_12, %c0_13] : memref<128x1xf32, #tpu.memory_space<vmem>>, vector<128x1xf32>
      %15 = vector.broadcast %14 : vector<128x1xf32> to vector<128x128xf32>
      %16 = arith.mulf %13, %15 : vector<128x128xf32>
      %17 = arith.truncf %16 : vector<128x128xf32> to vector<128x128xbf16>
      %c0_14 = arith.constant 0 : index
      %c0_15 = arith.constant 0 : index
      %18 = vector.load %arg6[%c0_14, %c0_15] : memref<128x128xbf16, #tpu.memory_space<vmem>>, vector<128x128xbf16>
      %cst_16 = arith.constant dense<0.000000e+00> : vector<128x128xf32>
      %19 = tpu.matmul %17, %18, %cst_16 {dimension_numbers = #tpu.dot_dimension_numbers<[1], [0], [0], [1], [0, 0, 1, 1], [], []>} : vector<128x128xbf16>, vector<128x128xbf16>, vector<128x128xf32> -> vector<128x128xf32>
      %c0_17 = arith.constant 0 : index
      %c0_18 = arith.constant 0 : index
      %20 = vector.load %arg4[%c0_17, %c0_18] : memref<128x128xbf16, #tpu.memory_space<vmem>>, vector<128x128xbf16>
      %c0_19 = arith.constant 0 : index
      %c0_20 = arith.constant 0 : index
      %21 = vector.load %arg7[%c0_19, %c0_20] : memref<128x128xbf16, #tpu.memory_space<vmem>>, vector<128x128xbf16>
      %cst_21 = arith.constant dense<0.000000e+00> : vector<128x128xf32>
      %22 = tpu.matmul %20, %21, %cst_21 {dimension_numbers = #tpu.dot_dimension_numbers<[1], [0], [0], [1], [0, 0, 1, 1], [], []>} : vector<128x128xbf16>, vector<128x128xbf16>, vector<128x128xf32> -> vector<128x128xf32>
      %23 = arith.addf %19, %22 : vector<128x128xf32>
      %c0_22 = arith.constant 0 : index
      %c0_23 = arith.constant 0 : index
      %24 = vector.load %arg8[%c0_22, %c0_23] : memref<1x128xf32, #tpu.memory_space<vmem>>, vector<1x128xf32>
      %25 = vector.broadcast %24 : vector<1x128xf32> to vector<128x128xf32>
      %26 = arith.addf %23, %25 : vector<128x128xf32>
      %cst_24 = arith.constant 0.000000e+00 : f32
      %27 = vector.broadcast %cst_24 : f32 to vector<128x128xf32>
      %28 = arith.maximumf %26, %27 : vector<128x128xf32>
      %29 = arith.truncf %28 : vector<128x128xf32> to vector<128x128xbf16>
      %c0_25 = arith.constant 0 : index
      %c0_26 = arith.constant 0 : index
      %30 = vector.load %arg9[%c0_25, %c0_26] : memref<128x128xbf16, #tpu.memory_space<vmem>>, vector<128x128xbf16>
      %cst_27 = arith.constant dense<0.000000e+00> : vector<128x128xf32>
      %31 = tpu.matmul %29, %30, %cst_27 {dimension_numbers = #tpu.dot_dimension_numbers<[1], [0], [0], [1], [0, 0, 1, 1], [], []>} : vector<128x128xbf16>, vector<128x128xbf16>, vector<128x128xf32> -> vector<128x128xf32>
      %c0_28 = arith.constant 0 : index
      %c0_29 = arith.constant 0 : index
      %32 = vector.load %arg10[%c0_28, %c0_29] : memref<1x128xf32, #tpu.memory_space<vmem>>, vector<1x128xf32>
      %33 = vector.broadcast %32 : vector<1x128xf32> to vector<128x128xf32>
      %34 = arith.addf %31, %33 : vector<128x128xf32>
      %c0_30 = arith.constant 0 : index
      %c0_31 = arith.constant 0 : index
      %35 = vector.load %arg11[%c0_30, %c0_31] : memref<128x128xf32, #tpu.memory_space<vmem>>, vector<128x128xf32>
      tpu.vector_store %arg11[%c0_30, %c0_31], %34 {strides = array<i32>} : memref<128x128xf32, #tpu.memory_space<vmem>>, vector<128x128xf32>,
    } else {
    }
    return
  }
  func.func @transform_0(%arg0: i32, %arg1: i32) -> (i32, i32) {
    %c0_i32 = arith.constant 0 : i32
    return %arg0, %arg1 : i32, i32
  }
  func.func @transform_1(%arg0: i32, %arg1: i32) -> (i32, i32) {
    %c0_i32 = arith.constant 0 : i32
    %c0_i32_0 = arith.constant 0 : i32
    return %arg1, %c0_i32 : i32, i32
  }
  func.func @transform_2(%arg0: i32, %arg1: i32) -> (i32, i32) {
    %c0_i32 = arith.constant 0 : i32
    %c0_i32_0 = arith.constant 0 : i32
    return %arg0, %c0_i32 : i32, i32
  }
  func.func @transform_3(%arg0: i32, %arg1: i32) -> (i32, i32) {
    %c0_i32 = arith.constant 0 : i32
    %c0_i32_0 = arith.constant 0 : i32
    return %arg0, %c0_i32 : i32, i32
  }
  func.func @transform_4(%arg0: i32, %arg1: i32) -> (i32, i32) {
    %c0_i32 = arith.constant 0 : i32
    %c0_i32_0 = arith.constant 0 : i32
    %c0_i32_1 = arith.constant 0 : i32
    return %c0_i32, %c0_i32_0 : i32, i32
  }
  func.func @transform_5(%arg0: i32, %arg1: i32) -> (i32, i32) {
    %c0_i32 = arith.constant 0 : i32
    %c0_i32_0 = arith.constant 0 : i32
    %c0_i32_1 = arith.constant 0 : i32
    return %c0_i32, %c0_i32_0 : i32, i32
  }
  func.func @transform_6(%arg0: i32, %arg1: i32) -> (i32, i32) {
    %c0_i32 = arith.constant 0 : i32
    %c0_i32_0 = arith.constant 0 : i32
    %c0_i32_1 = arith.constant 0 : i32
    return %c0_i32, %c0_i32_0 : i32, i32
  }
  func.func @transform_7(%arg0: i32, %arg1: i32) -> (i32, i32) {
    %c0_i32 = arith.constant 0 : i32
    %c0_i32_0 = arith.constant 0 : i32
    %c0_i32_1 = arith.constant 0 : i32
    return %c0_i32, %c0_i32_0 : i32, i32
  }
  func.func @transform_8(%arg0: i32, %arg1: i32) -> (i32, i32) {
    %c0_i32 = arith.constant 0 : i32
    %c0_i32_0 = arith.constant 0 : i32
    %c0_i32_1 = arith.constant 0 : i32
    return %c0_i32, %c0_i32_0 : i32, i32
  }
  func.func @transform_9(%arg0: i32, %arg1: i32) -> (i32, i32) {
    %c0_i32 = arith.constant 0 : i32
    %c0_i32_0 = arith.constant 0 : i32
    return %arg0, %c0_i32 : i32, i32
  }
}

</mosaic_0001>

<bundles_post_ra>
// kernel: household_assignment_gnn.3
= control target key start
LH: loop header
LB: loop body
LE: loop exit
PB: predicated region body
PF: predicated region fallthrough
CT: control target
= control target key end

     0   :  { %v1327_v1 = vmov 0   ;;  %s1616_s1 = inlined_call_operand.vmem [shape: bf16[128,128], index: 1, kind: input, shape index: {}, may-alias: {1,2}]   ;;  %s1617_s0 = inlined_call_operand.vmem [shape: s8[128,128], index: 0, kind: input, shape index: {}]   ;;  %s1618_s3 = inlined_call_operand.vmem [shape: f32[128,1], index: 3, kind: input, shape index: {}]   ;;  %s1619_s5 = inlined_call_operand.vmem [shape: bf16[128,128], index: 5, kind: input, shape index: {}]   ;;  %s1620_s4 = inlined_call_operand.vmem [shape: bf16[128,128], index: 4, kind: input, shape index: {}]   ;;  %s1621_s2 = inlined_call_operand.vmem [shape: bf16[128,128], index: 2, kind: input, shape index: {}, may-alias: {1,2}]   ;;  %s1622_s7 = inlined_call_operand.vmem [shape: bf16[128,128], index: 7, kind: input, shape index: {}]   ;;  %s1623_s6 = inlined_call_operand.vmem [shape: f32[1,128], index: 6, kind: input, shape index: {}]   ;;  %s1624_s8 = inlined_call_operand.vmem [shape: f32[1,128], index: 8, kind: input, shape index: {}]   ;;  %s1625_s9 = inlined_call_operand.vmem [shape: f32[128,128], index: 9, kind: output, shape index: {}]  }
   0x1   :  { %v1287_v0 = vld [vmem:[%s1616_s1] sm:$0xff]   ;;  %1285 = vset.pattern.permute.xlu0 %v1327_v1  ;;  %1286 = vset.pattern.permute.xlu1 %v1327_v1  ;;  %v1288_v2 = vld [vmem:[%s1616_s1 + $0x8] sm:$0xff]   ;;  %v1289_v3 = vld [vmem:[%s1616_s1 + $0x10] sm:$0xff]  }
   0x2   :  { %1140 = vmatprep.subr.bf16.mxu0 %v1287_v0  ;;  %v1290_v4 = vld [vmem:[%s1616_s1 + $0x18] sm:$0xff]   ;;  %v1393_v5 = vld [vmem:[%s1617_s0] sm:$0xff]  ;;  %v295_v8 = vld [vmem:[%s1618_s3 + $0x10] sm:$0xff] }
   0x3   :  { %1141 = vmatpush3.bf16.msra.mxu0 %v1287_v0  ;;  %v73_v6 = vunpack.c.l.s8.bf16 %v1393_v5  ;;  %v293_v7 = vld [vmem:[%s1618_s3] sm:$0xff]  ;;  %321 = vperm.xlu1 %1286, %v295_v8   ;;  %v294_v9 = vld [vmem:[%s1618_s3 + $0x8] sm:$0xff]  ;;  %v296_v10 = vld [vmem:[%s1618_s3 + $0x18] sm:$0xff]  ;;  %v74_v30 = vunpack.c.h.s8.bf16 %v1393_v5 }
   0x4   :  { %1142 = vmatprep.subr.bf16.mxu0 %v1288_v2  ;;  %311 = vperm.xlu0 %1285, %v293_v7   ;;  %v1291_v11 = vld [vmem:[%s1616_s1 + $0x20] sm:$0xff]   ;;  %v1292_v12 = vld [vmem:[%s1616_s1 + $0x28] sm:$0xff]   ;;  %v1293_v17 = vld [vmem:[%s1616_s1 + $0x30] sm:$0xff]  }
   0x5   :  { %1156 = vmatprep.mubr.bf16.mxu0 %v73_v6  ;;  %v297_v13 = vld [vmem:[%s1618_s3 + $0x20] sm:$0xff]  ;;  %v298_v14 = vld [vmem:[%s1618_s3 + $0x28] sm:$0xff]  ;;  %v299_v18 = vld [vmem:[%s1618_s3 + $0x30] sm:$0xff] }
   0x6   :  { %v1295_v15 = vld [vmem:[%s1619_s5] sm:$0xff]   ;;  %v1296_v16 = vld [vmem:[%s1619_s5 + $0x8] sm:$0xff]   ;;  %v300_v19 = vld [vmem:[%s1618_s3 + $0x38] sm:$0xff] }
   0x7   :  { %1143 = vmatpush3.bf16.msra.mxu0 %v1288_v2  ;;  %326 = vperm.xlu1 %1286, %v296_v10   ;;  %v1297_v20 = vld [vmem:[%s1619_s5 + $0x10] sm:$0xff]   ;;  %v1294_v21 = vld [vmem:[%s1616_s1 + $0x38] sm:$0xff]   ;;  %v301_v22 = vld [vmem:[%s1618_s3 + $0x40] sm:$0xff] }
   0x8   :  { %1144 = vmatprep.subr.bf16.mxu0 %v1289_v3  ;;  %316 = vperm.xlu0 %1285, %v294_v9   ;;  %v302_v23 = vld [vmem:[%s1618_s3 + $0x48] sm:$0xff]  ;;  %v1298_v24 = vld [vmem:[%s1619_s5 + $0x18] sm:$0xff]   ;;  %v1304_v25 = vld [vmem:[%s1621_s2] sm:$0xff]  }
   0x9   :  { %1172 = vmatprep.subr.bf16.mxu1 %v1295_v15  ;;  %v70_v26 = vld [vmem:[%s1617_s0 + $0x8] sm:$0xff]  ;;  %v303_v27 = vld [vmem:[%s1618_s3 + $0x50] sm:$0xff]  ;;  %v304_v28 = vld [vmem:[%s1618_s3 + $0x58] sm:$0xff]  ;;  %1188 = vmatprep.mubr.bf16.mxu1 %v1304_v25 }
   0xa   :  { %1173 = vmatpush3.bf16.msra.mxu1 %v1295_v15  ;;  %v1299_v29 = vld [vmem:[%s1619_s5 + $0x20] sm:$0xff]   ;;  %v75_v31 = vunpack.c.l.s8.bf16 %v70_v26  ;;  %v306_v33 = vld [vmem:[%s1618_s3 + $0x68] sm:$0xff]  ;;  %v307_v34 = vld [vmem:[%s1618_s3 + $0x70] sm:$0xff]  ;;  %v76_v39 = vunpack.c.h.s8.bf16 %v70_v26 }
   0xb   :  { %1145 = vmatpush3.bf16.msra.mxu0 %v1289_v3  ;;  %336 = vperm.xlu1 %1286, %v298_v14   ;;  %v305_v32 = vld [vmem:[%s1618_s3 + $0x60] sm:$0xff]  ;;  %v1300_v35 = vld [vmem:[%s1619_s5 + $0x28] sm:$0xff]   ;;  %v71_v36 = vld [vmem:[%s1617_s0 + $0x10] sm:$0xff] }
   0xc   :  { %1146 = vmatprep.subr.bf16.mxu0 %v1290_v4  ;;  %331 = vperm.xlu0 %1285, %v297_v13   ;;  %v308_v37 = vld [vmem:[%s1618_s3 + $0x78] sm:$0xff]  ;;  %v1301_v38 = vld [vmem:[%s1619_s5 + $0x30] sm:$0xff]   ;;  %v77_v40 = vunpack.c.l.s8.bf16 %v71_v36  ;;  %v1303_v43 = vld [vmem:[%s1620_s4] sm:$0xff]   ;;  %v78_v44 = vunpack.c.h.s8.bf16 %v71_v36 }
   0xd   :  { %1174 = vmatprep.subr.bf16.mxu1 %v1296_v16  ;;  %v1302_v41 = vld [vmem:[%s1619_s5 + $0x38] sm:$0xff]   ;;  %v1305_v46 = vld [vmem:[%s1621_s2 + $0x8] sm:$0xff]   ;;  %v1307_v47 = vld [vmem:[%s1621_s2 + $0x10] sm:$0xff]  }
   0xe   :  { %1175 = vmatpush3.bf16.msra.mxu1 %v1296_v16  ;;  %v72_v42 = vld [vmem:[%s1617_s0 + $0x18] sm:$0xff]  ;;  %v1306_v48 = vld [vmem:[%s1620_s4 + $0x8] sm:$0xff]   ;;  %v1308_v49 = vld [vmem:[%s1620_s4 + $0x10] sm:$0xff]  }
   0xf   :  { %1147 = vmatpush3.bf16.msra.mxu0 %v1290_v4  ;;  %346 = vperm.xlu1 %1286, %v300_v19   ;;  %v79_v45 = vunpack.c.l.s8.bf16 %v72_v42  ;;  %v80_v50 = vunpack.c.h.s8.bf16 %v72_v42  ;;  %v1309_v51 = vld [vmem:[%s1621_s2 + $0x18] sm:$0xff]   ;;  %v1311_v52 = vld [vmem:[%s1621_s2 + $0x20] sm:$0xff]   ;;  %v1313_v55 = vld [vmem:[%s1621_s2 + $0x28] sm:$0xff]  }
  0x10   :  { %1148 = vmatprep.subr.bf16.mxu0 %v1291_v11  ;;  %341 = vperm.xlu0 %1285, %v299_v18   ;;  %v1310_v53 = vld [vmem:[%s1620_s4 + $0x18] sm:$0xff]   ;;  %v1312_v54 = vld [vmem:[%s1620_s4 + $0x20] sm:$0xff]   ;;  %v1314_v56 = vld [vmem:[%s1620_s4 + $0x28] sm:$0xff]  }
  0x11   :  { %1176 = vmatprep.subr.bf16.mxu1 %v1297_v20  ;;  %v1315_v57 = vld [vmem:[%s1621_s2 + $0x30] sm:$0xff]   ;;  %v1317_v59 = vld [vmem:[%s1621_s2 + $0x38] sm:$0xff]   ;;  %v1319_v61 = vld [vmem:[%s1622_s7] sm:$0xff]  }
  0x12   :  { %1177 = vmatpush3.bf16.msra.mxu1 %v1297_v20  ;;  %v1316_v58 = vld [vmem:[%s1620_s4 + $0x30] sm:$0xff]   ;;  %v1318_v60 = vld [vmem:[%s1620_s4 + $0x38] sm:$0xff]   ;;  %v1320_v62 = vld [vmem:[%s1622_s7 + $0x8] sm:$0xff]  }
  0x13   :  { %1149 = vmatpush3.bf16.msra.mxu0 %v1291_v11  ;;  %356 = vperm.xlu1 %1286, %v302_v23   ;;  %v1321_v63 = vld [vmem:[%s1622_s7 + $0x10] sm:$0xff]   ;;  %v1322_v0 = vld [vmem:[%s1622_s7 + $0x18] sm:$0xff]   ;;  %v1323_v1 = vld [vmem:[%s1622_s7 + $0x20] sm:$0xff]  }
  0x14   :  { %1150 = vmatprep.subr.bf16.mxu0 %v1292_v12  ;;  %351 = vperm.xlu0 %1285, %v301_v22   ;;  %v1324_v2 = vld [vmem:[%s1622_s7 + $0x28] sm:$0xff]  }
  0x15   :  { %1178 = vmatprep.subr.bf16.mxu1 %v1298_v24 }
  0x16   :  { %1179 = vmatpush3.bf16.msra.mxu1 %v1298_v24 }
  0x17   :  { %1151 = vmatpush3.bf16.msra.mxu0 %v1292_v12  ;;  %366 = vperm.xlu1 %1286, %v304_v28  }
  0x18   :  { %1152 = vmatprep.subr.bf16.mxu0 %v1293_v17  ;;  %361 = vperm.xlu0 %1285, %v303_v27  }
  0x19   :  { %1180 = vmatprep.subr.bf16.mxu1 %v1299_v29 }
  0x1a   :  { %1181 = vmatpush3.bf16.msra.mxu1 %v1299_v29 }
  0x1b   :  { %1153 = vmatpush3.bf16.msra.mxu0 %v1293_v17  ;;  %376 = vperm.xlu1 %1286, %v306_v33  }
  0x1c   :  { %1154 = vmatprep.subr.bf16.mxu0 %v1294_v21  ;;  %371 = vperm.xlu0 %1285, %v305_v32  }
  0x1d   :  { %1182 = vmatprep.subr.bf16.mxu1 %v1300_v35 }
  0x1e   :  { %1183 = vmatpush3.bf16.msra.mxu1 %v1300_v35 }
  0x1f   :  { %1155 = vmatpush3.bf16.msra.mxu0 %v1294_v21  ;;  %386 = vperm.xlu1 %1286, %v308_v37  }
  0x20   :  { %381 = vperm.xlu0 %1285, %v307_v34   ;;  %1184 = vmatprep.subr.bf16.mxu1 %v1301_v38 }
  0x21   :  { %1236 = vmatprep.subr.bf16.mxu0 %v1319_v61 }
  0x22   :  { %1157 = vmatmul.mubr.bf16.vlgmr.msra.gmra.mrb[0].mxu0 %v74_v30  ;;  %1185 = vmatpush3.bf16.msra.mxu1 %v1301_v38 }
  0x23   :  { %1160 = vmatprep.mubr.bf16.mxu0 %v75_v31  ;;  %1186 = vmatprep.subr.bf16.mxu1 %v1302_v41 }
  0x24   :  { %1237 = vmatpush3.bf16.msra.mxu0 %v1319_v61  ;;  %v1066_v61 = vld [vmem:[%s1623_s6] ss:$0 sm:$0xff] }
  0x25   :  { %1238 = vmatprep.subr.bf16.mxu0 %v1320_v62 }
  0x26   :  { %1187 = vmatpush3.bf16.msra.mxu1 %v1302_v41 }
  0x27   :  { %1204 = vmatprep.subr.bf16.mxu1 %v1303_v43 }
  0x28   :  { %1239 = vmatpush3.bf16.msra.mxu0 %v1320_v62 }
  0x29   :  { %1189 = vmatmul.mubr.bf16.vlgmr.msra.gmra.mrb[0].mxu1 %v1305_v46  ;;  %1240 = vmatprep.subr.bf16.mxu0 %v1321_v63 }
  0x2a   :  { %1161 = vmatmul.mubr.bf16.gmra.mrb[4].mxu0 %v76_v39  ;;  %1205 = vmatpush3.bf16.msra.mxu1 %v1303_v43 }
  0x2b   :  { %1164 = vmatprep.mubr.bf16.mxu0 %v77_v40  ;;  %1192 = vmatprep.mubr.bf16.mxu1 %v1307_v47 }
  0x2c   :  { %1206 = vmatprep.subr.bf16.mxu1 %v1306_v48  ;;  %1241 = vmatpush3.bf16.msra.mxu0 %v1321_v63 }
  0x2d   :  { %1242 = vmatprep.subr.bf16.mxu0 %v1322_v0 }
  0x2e   :  { %1207 = vmatpush3.bf16.msra.mxu1 %v1306_v48 }
  0x2f   :  { %1208 = vmatprep.subr.bf16.mxu1 %v1308_v49 }
  0x30   :  { %1243 = vmatpush3.bf16.msra.mxu0 %v1322_v0 }
  0x31   :  { %1193 = vmatmul.mubr.bf16.gmra.mrb[4].mxu1 %v1309_v51  ;;  %1244 = vmatprep.subr.bf16.mxu0 %v1323_v1 }
  0x32   :  { %1165 = vmatmul.mubr.bf16.gmra.mrb[8].mxu0 %v78_v44  ;;  %1209 = vmatpush3.bf16.msra.mxu1 %v1308_v49 }
  0x33   :  { %1168 = vmatprep.mubr.bf16.mxu0 %v79_v45  ;;  %1196 = vmatprep.mubr.bf16.mxu1 %v1311_v52 }
  0x34   :  { %1210 = vmatprep.subr.bf16.mxu1 %v1310_v53  ;;  %1245 = vmatpush3.bf16.msra.mxu0 %v1323_v1 }
  0x35   :  { %1246 = vmatprep.subr.bf16.mxu0 %v1324_v2 }
  0x36   :  { %1211 = vmatpush3.bf16.msra.mxu1 %v1310_v53 }
  0x37   :  { %1212 = vmatprep.subr.bf16.mxu1 %v1312_v54 }
  0x38   :  { %1247 = vmatpush3.bf16.msra.mxu0 %v1324_v2 }
  0x39   :  { %1197 = vmatmul.mubr.bf16.gmra.mrb[8].mxu1 %v1313_v55 }
  0x3a   :  { %1169 = vmatmul.mubr.bf16.gmra.mrb[12].mxu0 %v80_v50  ;;  %1213 = vmatpush3.bf16.msra.mxu1 %v1312_v54 }
  0x3b   :  { %1214 = vmatprep.subr.bf16.mxu1 %v1314_v56  ;;  %1200 = vmatprep.mubr.bf16.mxu1 %v1315_v57 }
  0x3e   :  { %1215 = vmatpush3.bf16.msra.mxu1 %v1314_v56 }
  0x3f   :  { %1216 = vmatprep.subr.bf16.mxu1 %v1316_v58 }
  0x41   :  { %1201 = vmatmul.mubr.bf16.gmra.mrb[12].mxu1 %v1317_v59  ;;  %v1325_v59 = vld [vmem:[%s1622_s7 + $0x30] sm:$0xff]  }
  0x42   :  { %1217 = vmatpush3.bf16.msra.mxu1 %v1316_v58  ;;  %1248 = vmatprep.subr.bf16.mxu0 %v1325_v59 }
  0x43   :  { %1218 = vmatprep.subr.bf16.mxu1 %v1318_v60  ;;  %1249 = vmatpush3.bf16.msra.mxu0 %v1325_v59 }
  0x46   :  { %1219 = vmatpush3.bf16.msra.mxu1 %v1318_v60  ;;  %v1326_v60 = vld [vmem:[%s1622_s7 + $0x38] sm:$0xff]  }
  0x47   :  { %1250 = vmatprep.subr.bf16.mxu0 %v1326_v60 }
  0x48   :  { %1251 = vmatpush3.bf16.msra.mxu0 %v1326_v60 }
  0x82   :  { %v322_v4 = vpop.permute.xlu1 %321 }
  0x83   :  { %v312_v3 = vpop.permute.xlu0 %311 }
  0x86   :  { %v327_v6 = vpop.permute.xlu1 %326 }
  0x87   :  { %v317_v5 = vpop.permute.xlu0 %316 }
  0x8a   :  { %v337_v8 = vpop.permute.xlu1 %336 }
  0x8b   :  { %v332_v7 = vpop.permute.xlu0 %331 }
  0x8e   :  { %v347_v12 = vpop.permute.xlu1 %346 }
  0x8f   :  { %v342_v10 = vpop.permute.xlu0 %341 }
  0x92   :  { %v357_v22 = vpop.permute.xlu1 %356 }
  0x93   :  { %v352_v21 = vpop.permute.xlu0 %351 }
  0x96   :  { %v367_v33 = vpop.permute.xlu1 %366 }
  0x97   :  { %v362_v31 = vpop.permute.xlu0 %361 }
  0x9a   :  { %v377_v42 = vpop.permute.xlu1 %376 }
  0x9b   :  { %v372_v38 = vpop.permute.xlu0 %371 }
  0x9e   :  { %v387_v50 = vpop.permute.xlu1 %386 }
  0x9f   :  { %v382_v48 = vpop.permute.xlu0 %381 }
  0xf5   :  { %v1158_v9 = vpop.f32.mrb[0].mxu0 }
  0xf6   :  { %v179_v11 = vpop.f32.mrb[1].mxu0  ;;  %v391_v14 = vmul.f32 %v1158_v9, %v322_v4 }
  0xf7   :  { %v1159_v13 = vpop.f32.mrb[2].mxu0  ;;  %v389_v17 = vmul.f32 %v312_v3, %v179_v11 }
  0xf8   :  { %v392_v15 = vmul.f32 %v1159_v13, %v327_v6  ;;  %v182_v16 = vpop.f32.mrb[3].mxu0 }
  0xf9   :  { %v390_v18 = vmul.f32 %v317_v5, %v182_v16 }
  0xfa   :  { %v406_v19 = vpack.c.bf16 %v392_v15, %v391_v14 }
  0xfb   :  { %v405_v20 = vpack.c.bf16 %v390_v18, %v389_v17 }
  0xfd   :  { %v1162_v23 = vpop.f32.mrb[4].mxu0  ;;  %1220 = vmatprep.mubr.bf16.mxu1 %v405_v20 }
  0xfe   :  { %v195_v24 = vpop.f32.mrb[5].mxu0  ;;  %1221 = vmatmul.mubr.bf16.vlgmr.msra.gmra.mrb[0].mxu1 %v406_v19  ;;  %v395_v26 = vmul.f32 %v1162_v23, %v342_v10 }
  0xff   :  { %v1163_v25 = vpop.f32.mrb[6].mxu0  ;;  %v393_v29 = vmul.f32 %v332_v7, %v195_v24 }
 0x100   :  { %v396_v27 = vmul.f32 %v1163_v25, %v347_v12  ;;  %v198_v28 = vpop.f32.mrb[7].mxu0 }
 0x101   :  { %v394_v30 = vmul.f32 %v337_v8, %v198_v28 }
 0x102   :  { %v408_v32 = vpack.c.bf16 %v396_v27, %v395_v26 }
 0x103   :  { %v407_v34 = vpack.c.bf16 %v394_v30, %v393_v29 }
 0x105   :  { %v1166_v35 = vpop.f32.mrb[8].mxu0  ;;  %1224 = vmatprep.mubr.bf16.mxu1 %v407_v34 }
 0x106   :  { %v211_v36 = vpop.f32.mrb[9].mxu0  ;;  %1225 = vmatmul.mubr.bf16.gmra.mrb[4].mxu1 %v408_v32  ;;  %v399_v39 = vmul.f32 %v1166_v35, %v362_v31 }
 0x107   :  { %v1167_v37 = vpop.f32.mrb[10].mxu0  ;;  %v397_v43 = vmul.f32 %v352_v21, %v211_v36 }
 0x108   :  { %v400_v40 = vmul.f32 %v1167_v37, %v367_v33  ;;  %v214_v41 = vpop.f32.mrb[11].mxu0 }
 0x109   :  { %v398_v44 = vmul.f32 %v357_v22, %v214_v41 }
 0x10a   :  { %v410_v45 = vpack.c.bf16 %v400_v40, %v399_v39 }
 0x10b   :  { %v409_v46 = vpack.c.bf16 %v398_v44, %v397_v43 }
 0x10d   :  { %v1170_v47 = vpop.f32.mrb[12].mxu0  ;;  %1228 = vmatprep.mubr.bf16.mxu1 %v409_v46 }
 0x10e   :  { %v227_v49 = vpop.f32.mrb[13].mxu0  ;;  %1229 = vmatmul.mubr.bf16.gmra.mrb[8].mxu1 %v410_v45  ;;  %v403_v52 = vmul.f32 %v1170_v47, %v382_v48 }
 0x10f   :  { %v1171_v51 = vpop.f32.mrb[14].mxu0  ;;  %v401_v55 = vmul.f32 %v372_v38, %v227_v49 }
 0x110   :  { %v404_v53 = vmul.f32 %v1171_v51, %v387_v50  ;;  %v230_v54 = vpop.f32.mrb[15].mxu0 }
 0x111   :  { %v402_v56 = vmul.f32 %v377_v42, %v230_v54  ;;  %v1067_v54 = vld [vmem:[%s1624_s8] ss:$0 sm:$0xff] }
 0x112   :  { %v412_v57 = vpack.c.bf16 %v404_v53, %v403_v52 }
 0x113   :  { %v411_v58 = vpack.c.bf16 %v402_v56, %v401_v55 }
 0x115   :  { %1232 = vmatprep.mubr.bf16.mxu1 %v411_v58 }
 0x116   :  { %1233 = vmatmul.mubr.bf16.gmra.mrb[12].mxu1 %v412_v57 }
 0x1d1   :  { %v1222_v62 = vpop.f32.mrb[0].mxu1 }
 0x1d2   :  { %v808_v63 = vadd.f32 %v1222_v62, %v1066_v61  ;;  %v736_v0 = vpop.f32.mrb[1].mxu1 }
 0x1d3   :  { %v806_v1 = vadd.f32 %v1066_v61, %v736_v0  ;;  %v1223_v2 = vpop.f32.mrb[2].mxu1 }
 0x1d4   :  { %v809_v3 = vadd.f32 %v1223_v2, %v1066_v61  ;;  %v739_v4 = vpop.f32.mrb[3].mxu1  ;;  %v824_v6 = vmax.f32 %v808_v63, 0.0 }
 0x1d5   :  { %v807_v5 = vadd.f32 %v1066_v61, %v739_v4  ;;  %v822_v8 = vmax.f32 %v806_v1, 0.0 }
 0x1d6   :  { %v825_v7 = vmax.f32 %v809_v3, 0.0 }
 0x1d7   :  { %v823_v9 = vmax.f32 %v807_v5, 0.0 }
 0x1d8   :  { %v839_v10 = vpack.c.bf16 %v825_v7, %v824_v6 }
 0x1d9   :  { %v838_v11 = vpack.c.bf16 %v823_v9, %v822_v8  ;;  %v1226_v12 = vpop.f32.mrb[4].mxu1 }
 0x1da   :  { %v812_v13 = vadd.f32 %v1226_v12, %v1066_v61  ;;  %v752_v14 = vpop.f32.mrb[5].mxu1 }
 0x1db   :  { %v810_v15 = vadd.f32 %v1066_v61, %v752_v14  ;;  %v1227_v16 = vpop.f32.mrb[6].mxu1  ;;  %1252 = vmatprep.mubr.bf16.mxu0 %v838_v11 }
 0x1dc   :  { %v813_v17 = vadd.f32 %v1227_v16, %v1066_v61  ;;  %v755_v18 = vpop.f32.mrb[7].mxu1  ;;  %1253 = vmatmul.mubr.bf16.vlgmr.msra.gmra.mrb[16].mxu0 %v839_v10  ;;  %v828_v20 = vmax.f32 %v812_v13, 0.0 }
 0x1dd   :  { %v811_v19 = vadd.f32 %v1066_v61, %v755_v18  ;;  %v826_v22 = vmax.f32 %v810_v15, 0.0 }
 0x1de   :  { %v829_v21 = vmax.f32 %v813_v17, 0.0 }
 0x1df   :  { %v827_v23 = vmax.f32 %v811_v19, 0.0 }
 0x1e0   :  { %v841_v24 = vpack.c.bf16 %v829_v21, %v828_v20 }
 0x1e1   :  { %v840_v25 = vpack.c.bf16 %v827_v23, %v826_v22  ;;  %v1230_v26 = vpop.f32.mrb[8].mxu1 }
 0x1e2   :  { %v816_v27 = vadd.f32 %v1230_v26, %v1066_v61  ;;  %v768_v28 = vpop.f32.mrb[9].mxu1 }
 0x1e3   :  { %v814_v29 = vadd.f32 %v1066_v61, %v768_v28  ;;  %v1231_v30 = vpop.f32.mrb[10].mxu1  ;;  %1256 = vmatprep.mubr.bf16.mxu0 %v840_v25 }
 0x1e4   :  { %v817_v31 = vadd.f32 %v1231_v30, %v1066_v61  ;;  %v771_v32 = vpop.f32.mrb[11].mxu1  ;;  %1257 = vmatmul.mubr.bf16.gmra.mrb[20].mxu0 %v841_v24  ;;  %v832_v34 = vmax.f32 %v816_v27, 0.0 }
 0x1e5   :  { %v815_v33 = vadd.f32 %v1066_v61, %v771_v32  ;;  %v830_v36 = vmax.f32 %v814_v29, 0.0 }
 0x1e6   :  { %v833_v35 = vmax.f32 %v817_v31, 0.0 }
 0x1e7   :  { %v831_v37 = vmax.f32 %v815_v33, 0.0 }
 0x1e8   :  { %v843_v38 = vpack.c.bf16 %v833_v35, %v832_v34 }
 0x1e9   :  { %v842_v39 = vpack.c.bf16 %v831_v37, %v830_v36  ;;  %v1234_v40 = vpop.f32.mrb[12].mxu1 }
 0x1ea   :  { %v820_v41 = vadd.f32 %v1234_v40, %v1066_v61  ;;  %v784_v42 = vpop.f32.mrb[13].mxu1 }
 0x1eb   :  { %v818_v43 = vadd.f32 %v1066_v61, %v784_v42  ;;  %v1235_v44 = vpop.f32.mrb[14].mxu1  ;;  %1260 = vmatprep.mubr.bf16.mxu0 %v842_v39 }
 0x1ec   :  { %v821_v45 = vadd.f32 %v1235_v44, %v1066_v61  ;;  %v787_v46 = vpop.f32.mrb[15].mxu1  ;;  %1261 = vmatmul.mubr.bf16.gmra.mrb[24].mxu0 %v843_v38  ;;  %v836_v48 = vmax.f32 %v820_v41, 0.0 }
 0x1ed   :  { %v819_v47 = vadd.f32 %v1066_v61, %v787_v46  ;;  %v834_v50 = vmax.f32 %v818_v43, 0.0 }
 0x1ee   :  { %v837_v49 = vmax.f32 %v821_v45, 0.0 }
 0x1ef   :  { %v835_v51 = vmax.f32 %v819_v47, 0.0 }
 0x1f0   :  { %v845_v52 = vpack.c.bf16 %v837_v49, %v836_v48 }
 0x1f1   :  { %v844_v53 = vpack.c.bf16 %v835_v51, %v834_v50 }
 0x1f3   :  { %1264 = vmatprep.mubr.bf16.mxu0 %v844_v53 }
 0x1f4   :  { %1265 = vmatmul.mubr.bf16.gmra.mrb[28].mxu0 %v845_v52 }
 0x2af   :  { %v1254_v55 = vpop.f32.mrb[16].mxu0 }
 0x2b0   :  { %v960_v56 = vadd.f32 %v1254_v55, %v1067_v54  ;;  %v951_v57 = vpop.f32.mrb[17].mxu0 }
 0x2b1   :  { %v952_v58 = vadd.f32 %v1067_v54, %v951_v57  ;;  %v1255_v59 = vpop.f32.mrb[18].mxu0 }
 0x2b2   :  { %1016 = vst [vmem:[%s1625_s9 + $0x10] sm:$0xff] %v960_v56  ;;  %v963_v60 = vadd.f32 %v1255_v59, %v1067_v54  ;;  %v954_v61 = vpop.f32.mrb[19].mxu0 }
 0x2b3   :  { %1014 = vst [vmem:[%s1625_s9] sm:$0xff] %v952_v58  ;;  %v955_v62 = vadd.f32 %v1067_v54, %v954_v61 }
 0x2b4   :  { %1017 = vst [vmem:[%s1625_s9 + $0x18] sm:$0xff] %v963_v60 }
 0x2b5   :  { %1015 = vst [vmem:[%s1625_s9 + $0x8] sm:$0xff] %v955_v62 }
 0x2b7   :  { %v1258_v63 = vpop.f32.mrb[20].mxu0 }
 0x2b8   :  { %v976_v0 = vadd.f32 %v1258_v63, %v1067_v54  ;;  %v967_v1 = vpop.f32.mrb[21].mxu0 }
 0x2b9   :  { %v968_v2 = vadd.f32 %v1067_v54, %v967_v1  ;;  %v1259_v3 = vpop.f32.mrb[22].mxu0 }
 0x2ba   :  { %1020 = vst [vmem:[%s1625_s9 + $0x30] sm:$0xff] %v976_v0  ;;  %v979_v4 = vadd.f32 %v1259_v3, %v1067_v54  ;;  %v970_v5 = vpop.f32.mrb[23].mxu0 }
 0x2bb   :  { %1018 = vst [vmem:[%s1625_s9 + $0x20] sm:$0xff] %v968_v2  ;;  %v971_v6 = vadd.f32 %v1067_v54, %v970_v5 }
 0x2bc   :  { %1021 = vst [vmem:[%s1625_s9 + $0x38] sm:$0xff] %v979_v4 }
 0x2bd   :  { %1019 = vst [vmem:[%s1625_s9 + $0x28] sm:$0xff] %v971_v6 }
 0x2bf   :  { %v1262_v7 = vpop.f32.mrb[24].mxu0 }
 0x2c0   :  { %v992_v8 = vadd.f32 %v1262_v7, %v1067_v54  ;;  %v983_v9 = vpop.f32.mrb[25].mxu0 }
 0x2c1   :  { %v984_v10 = vadd.f32 %v1067_v54, %v983_v9  ;;  %v1263_v11 = vpop.f32.mrb[26].mxu0 }
 0x2c2   :  { %1024 = vst [vmem:[%s1625_s9 + $0x50] sm:$0xff] %v992_v8  ;;  %v995_v12 = vadd.f32 %v1263_v11, %v1067_v54  ;;  %v986_v13 = vpop.f32.mrb[27].mxu0 }
 0x2c3   :  { %1022 = vst [vmem:[%s1625_s9 + $0x40] sm:$0xff] %v984_v10  ;;  %v987_v14 = vadd.f32 %v1067_v54, %v986_v13 }
 0x2c4   :  { %1025 = vst [vmem:[%s1625_s9 + $0x58] sm:$0xff] %v995_v12 }
 0x2c5   :  { %1023 = vst [vmem:[%s1625_s9 + $0x48] sm:$0xff] %v987_v14 }
 0x2c7   :  { %v1266_v15 = vpop.f32.mrb[28].mxu0 }
 0x2c8   :  { %v1008_v16 = vadd.f32 %v1266_v15, %v1067_v54  ;;  %v999_v17 = vpop.f32.mrb[29].mxu0 }
 0x2c9   :  { %v1000_v18 = vadd.f32 %v1067_v54, %v999_v17  ;;  %v1267_v19 = vpop.f32.mrb[30].mxu0 }
 0x2ca   :  { %1028 = vst [vmem:[%s1625_s9 + $0x70] sm:$0xff] %v1008_v16  ;;  %v1011_v20 = vadd.f32 %v1267_v19, %v1067_v54  ;;  %v1002_v21 = vpop.f32.mrb[31].mxu0 }
 0x2cb   :  { %1026 = vst [vmem:[%s1625_s9 + $0x60] sm:$0xff] %v1000_v18  ;;  %v1003_v22 = vadd.f32 %v1067_v54, %v1002_v21 }
 0x2cc   :  { %1029 = vst [vmem:[%s1625_s9 + $0x78] sm:$0xff] %v1011_v20 }
 0x2cd   :  { %1027 = vst [vmem:[%s1625_s9 + $0x68] sm:$0xff] %v1003_v22 }

// kernel: household_assignment_gnn.2
= control target key start
LH: loop header
LB: loop body
LE: loop exit
PB: predicated region body
PF: predicated region fallthrough
CT: control target
= control target key end

     0   :  { %v1239_v1 = vmov 0   ;;  %s1485_s1 = inlined_call_operand.vmem [shape: bf16[128,128], index: 1, kind: input, shape index: {}, may-alias: {1,2}]   ;;  %s1486_s0 = inlined_call_operand.vmem [shape: s8[128,128], index: 0, kind: input, shape index: {}]   ;;  %s1487_s3 = inlined_call_operand.vmem [shape: f32[128,1], index: 3, kind: input, shape index: {}]   ;;  %s1488_s5 = inlined_call_operand.vmem [shape: bf16[128,128], index: 5, kind: input, shape index: {}]   ;;  %s1489_s4 = inlined_call_operand.vmem [shape: bf16[128,128], index: 4, kind: input, shape index: {}]   ;;  %s1490_s2 = inlined_call_operand.vmem [shape: bf16[128,128], index: 2, kind: input, shape index: {}, may-alias: {1,2}]   ;;  %s1491_s6 = inlined_call_operand.vmem [shape: f32[1,128], index: 6, kind: input, shape index: {}]   ;;  %s1492_s7 = inlined_call_operand.vmem [shape: bf16[128,128], index: 7, kind: output, shape index: {}]  }
   0x1   :  { %v1207_v0 = vld [vmem:[%s1485_s1] sm:$0xff]   ;;  %1206 = vset.pattern.permute.xlu1 %v1239_v1  ;;  %1205 = vset.pattern.permute.xlu0 %v1239_v1  ;;  %v1208_v2 = vld [vmem:[%s1485_s1 + $0x8] sm:$0xff]   ;;  %v1209_v3 = vld [vmem:[%s1485_s1 + $0x10] sm:$0xff]  }
   0x2   :  { %1076 = vmatprep.subr.bf16.mxu0 %v1207_v0  ;;  %v1210_v4 = vld [vmem:[%s1485_s1 + $0x18] sm:$0xff]   ;;  %v1295_v5 = vld [vmem:[%s1486_s0] sm:$0xff]  ;;  %v289_v7 = vld [vmem:[%s1487_s3 + $0x10] sm:$0xff] }
   0x3   :  { %1077 = vmatpush3.bf16.msra.mxu0 %v1207_v0  ;;  %v67_v6 = vunpack.c.l.s8.bf16 %v1295_v5  ;;  %v287_v8 = vld [vmem:[%s1487_s3] sm:$0xff]  ;;  %315 = vperm.xlu1 %1206, %v289_v7   ;;  %v290_v9 = vld [vmem:[%s1487_s3 + $0x18] sm:$0xff]  ;;  %v288_v10 = vld [vmem:[%s1487_s3 + $0x8] sm:$0xff]  ;;  %v68_v32 = vunpack.c.h.s8.bf16 %v1295_v5 }
   0x4   :  { %1078 = vmatprep.subr.bf16.mxu0 %v1208_v2  ;;  %305 = vperm.xlu0 %1205, %v287_v8   ;;  %v1211_v11 = vld [vmem:[%s1485_s1 + $0x20] sm:$0xff]   ;;  %v1212_v12 = vld [vmem:[%s1485_s1 + $0x28] sm:$0xff]   ;;  %v1213_v17 = vld [vmem:[%s1485_s1 + $0x30] sm:$0xff]  }
   0x5   :  { %1092 = vmatprep.mubr.bf16.mxu0 %v67_v6  ;;  %v296_v13 = vld [vmem:[%s1487_s3 + $0x48] sm:$0xff]  ;;  %v295_v14 = vld [vmem:[%s1487_s3 + $0x40] sm:$0xff]  ;;  %v298_v18 = vld [vmem:[%s1487_s3 + $0x58] sm:$0xff] }
   0x6   :  { %v1215_v15 = vld [vmem:[%s1488_s5] sm:$0xff]   ;;  %v1216_v16 = vld [vmem:[%s1488_s5 + $0x8] sm:$0xff]   ;;  %v297_v19 = vld [vmem:[%s1487_s3 + $0x50] sm:$0xff] }
   0x7   :  { %1079 = vmatpush3.bf16.msra.mxu0 %v1208_v2  ;;  %320 = vperm.xlu1 %1206, %v290_v9   ;;  %v1217_v20 = vld [vmem:[%s1488_s5 + $0x10] sm:$0xff]   ;;  %v1214_v21 = vld [vmem:[%s1485_s1 + $0x38] sm:$0xff]   ;;  %v292_v22 = vld [vmem:[%s1487_s3 + $0x28] sm:$0xff] }
   0x8   :  { %1080 = vmatprep.subr.bf16.mxu0 %v1209_v3  ;;  %310 = vperm.xlu0 %1205, %v288_v10   ;;  %v291_v23 = vld [vmem:[%s1487_s3 + $0x20] sm:$0xff]  ;;  %v1218_v24 = vld [vmem:[%s1488_s5 + $0x18] sm:$0xff]   ;;  %v293_v26 = vld [vmem:[%s1487_s3 + $0x30] sm:$0xff] }
   0x9   :  { %1108 = vmatprep.subr.bf16.mxu1 %v1215_v15  ;;  %v294_v25 = vld [vmem:[%s1487_s3 + $0x38] sm:$0xff]  ;;  %v64_v27 = vld [vmem:[%s1486_s0 + $0x8] sm:$0xff]  ;;  %v1226_v28 = vld [vmem:[%s1490_s2] sm:$0xff]  }
   0xa   :  { %1109 = vmatpush3.bf16.msra.mxu1 %v1215_v15  ;;  %v1219_v29 = vld [vmem:[%s1488_s5 + $0x20] sm:$0xff]   ;;  %v300_v31 = vld [vmem:[%s1487_s3 + $0x68] sm:$0xff]  ;;  %1124 = vmatprep.mubr.bf16.mxu1 %v1226_v28  ;;  %v69_v34 = vunpack.c.l.s8.bf16 %v64_v27  ;;  %v65_v37 = vld [vmem:[%s1486_s0 + $0x10] sm:$0xff]  ;;  %v70_v42 = vunpack.c.h.s8.bf16 %v64_v27 }
   0xb   :  { %1081 = vmatpush3.bf16.msra.mxu0 %v1209_v3  ;;  %350 = vperm.xlu1 %1206, %v296_v13   ;;  %v1220_v30 = vld [vmem:[%s1489_s4] sm:$0xff]   ;;  %v1221_v35 = vld [vmem:[%s1488_s5 + $0x28] sm:$0xff]   ;;  %v302_v38 = vld [vmem:[%s1487_s3 + $0x78] sm:$0xff]  ;;  %v71_v43 = vunpack.c.l.s8.bf16 %v65_v37  ;;  %v72_v48 = vunpack.c.h.s8.bf16 %v65_v37 }
   0xc   :  { %1082 = vmatprep.subr.bf16.mxu0 %v1210_v4  ;;  %345 = vperm.xlu0 %1205, %v295_v14   ;;  %v299_v33 = vld [vmem:[%s1487_s3 + $0x60] sm:$0xff]  ;;  %v1222_v36 = vld [vmem:[%s1489_s4 + $0x8] sm:$0xff]   ;;  %v301_v39 = vld [vmem:[%s1487_s3 + $0x70] sm:$0xff] }
   0xd   :  { %1110 = vmatprep.subr.bf16.mxu1 %v1216_v16  ;;  %v1223_v40 = vld [vmem:[%s1488_s5 + $0x30] sm:$0xff]   ;;  %v1225_v44 = vld [vmem:[%s1488_s5 + $0x38] sm:$0xff]   ;;  %v1229_v47 = vld [vmem:[%s1489_s4 + $0x20] sm:$0xff]  }
   0xe   :  { %1111 = vmatpush3.bf16.msra.mxu1 %v1216_v16  ;;  %v1224_v41 = vld [vmem:[%s1489_s4 + $0x10] sm:$0xff]   ;;  %v1227_v45 = vld [vmem:[%s1489_s4 + $0x18] sm:$0xff]   ;;  %v1228_v50 = vld [vmem:[%s1490_s2 + $0x8] sm:$0xff]  }
   0xf   :  { %1083 = vmatpush3.bf16.msra.mxu0 %v1210_v4  ;;  %360 = vperm.xlu1 %1206, %v298_v18   ;;  %v66_v46 = vld [vmem:[%s1486_s0 + $0x18] sm:$0xff]  ;;  %v1230_v51 = vld [vmem:[%s1490_s2 + $0x10] sm:$0xff]   ;;  %v1231_v52 = vld [vmem:[%s1489_s4 + $0x28] sm:$0xff]  }
  0x10   :  { %1084 = vmatprep.subr.bf16.mxu0 %v1211_v11  ;;  %355 = vperm.xlu0 %1205, %v297_v19   ;;  %v73_v49 = vunpack.c.l.s8.bf16 %v66_v46  ;;  %v74_v53 = vunpack.c.h.s8.bf16 %v66_v46  ;;  %v1232_v54 = vld [vmem:[%s1490_s2 + $0x18] sm:$0xff]   ;;  %v1233_v55 = vld [vmem:[%s1489_s4 + $0x30] sm:$0xff]   ;;  %v1235_v57 = vld [vmem:[%s1490_s2 + $0x20] sm:$0xff]  }
  0x11   :  { %1112 = vmatprep.subr.bf16.mxu1 %v1217_v20  ;;  %v1234_v56 = vld [vmem:[%s1489_s4 + $0x38] sm:$0xff]   ;;  %v1236_v58 = vld [vmem:[%s1490_s2 + $0x28] sm:$0xff]   ;;  %v1237_v59 = vld [vmem:[%s1490_s2 + $0x30] sm:$0xff]  }
  0x12   :  { %1113 = vmatpush3.bf16.msra.mxu1 %v1217_v20  ;;  %v1238_v60 = vld [vmem:[%s1490_s2 + $0x38] sm:$0xff]  }
  0x13   :  { %1085 = vmatpush3.bf16.msra.mxu0 %v1211_v11  ;;  %330 = vperm.xlu1 %1206, %v292_v22  }
  0x14   :  { %1086 = vmatprep.subr.bf16.mxu0 %v1212_v12  ;;  %325 = vperm.xlu0 %1205, %v291_v23  }
  0x15   :  { %1114 = vmatprep.subr.bf16.mxu1 %v1218_v24 }
  0x16   :  { %1115 = vmatpush3.bf16.msra.mxu1 %v1218_v24 }
  0x17   :  { %1087 = vmatpush3.bf16.msra.mxu0 %v1212_v12  ;;  %340 = vperm.xlu1 %1206, %v294_v25  }
  0x18   :  { %1088 = vmatprep.subr.bf16.mxu0 %v1213_v17  ;;  %335 = vperm.xlu0 %1205, %v293_v26  }
  0x19   :  { %1116 = vmatprep.subr.bf16.mxu1 %v1219_v29 }
  0x1a   :  { %1117 = vmatpush3.bf16.msra.mxu1 %v1219_v29 }
  0x1b   :  { %1089 = vmatpush3.bf16.msra.mxu0 %v1213_v17  ;;  %370 = vperm.xlu1 %1206, %v300_v31  }
  0x1c   :  { %1090 = vmatprep.subr.bf16.mxu0 %v1214_v21  ;;  %365 = vperm.xlu0 %1205, %v299_v33  }
  0x1d   :  { %1118 = vmatprep.subr.bf16.mxu1 %v1221_v35 }
  0x1e   :  { %1119 = vmatpush3.bf16.msra.mxu1 %v1221_v35 }
  0x1f   :  { %1091 = vmatpush3.bf16.msra.mxu0 %v1214_v21  ;;  %380 = vperm.xlu1 %1206, %v302_v38  }
  0x20   :  { %1140 = vmatprep.subr.bf16.mxu0 %v1220_v30  ;;  %375 = vperm.xlu0 %1205, %v301_v39  }
  0x21   :  { %1120 = vmatprep.subr.bf16.mxu1 %v1223_v40 }
  0x22   :  { %1093 = vmatmul.mubr.bf16.vlgmr.msra.gmra.mrb[0].mxu0 %v68_v32  ;;  %1121 = vmatpush3.bf16.msra.mxu1 %v1223_v40 }
  0x23   :  { %1096 = vmatprep.mubr.bf16.mxu0 %v69_v34  ;;  %1141 = vmatpush3.bf16.msra.mxu0 %v1220_v30 }
  0x24   :  { %1142 = vmatprep.subr.bf16.mxu0 %v1222_v36  ;;  %1122 = vmatprep.subr.bf16.mxu1 %v1225_v44 }
  0x26   :  { %1123 = vmatpush3.bf16.msra.mxu1 %v1225_v44 }
  0x27   :  { %1143 = vmatpush3.bf16.msra.mxu0 %v1222_v36  ;;  %1172 = vmatprep.subr.bf16.mxu1 %v1220_v30 }
  0x28   :  { %1144 = vmatprep.subr.bf16.mxu0 %v1224_v41 }
  0x29   :  { %1125 = vmatmul.mubr.bf16.vlgmr.msra.gmra.mrb[0].mxu1 %v1228_v50 }
  0x2a   :  { %1097 = vmatmul.mubr.bf16.gmra.mrb[4].mxu0 %v70_v42  ;;  %1180 = vmatpush3.bf16.msra.mxu1 %v1220_v30 }
  0x2b   :  { %1100 = vmatprep.mubr.bf16.mxu0 %v71_v43  ;;  %1145 = vmatpush3.bf16.msra.mxu0 %v1224_v41 }
  0x2c   :  { %1146 = vmatprep.subr.bf16.mxu0 %v1227_v45  ;;  %1173 = vmatprep.subr.bf16.mxu1 %v1222_v36 }
  0x2d   :  { %1128 = vmatprep.mubr.bf16.mxu1 %v1230_v51 }
  0x2e   :  { %1181 = vmatpush3.bf16.msra.mxu1 %v1222_v36 }
  0x2f   :  { %1147 = vmatpush3.bf16.msra.mxu0 %v1227_v45  ;;  %1174 = vmatprep.subr.bf16.mxu1 %v1224_v41 }
  0x30   :  { %1148 = vmatprep.subr.bf16.mxu0 %v1229_v47 }
  0x31   :  { %1129 = vmatmul.mubr.bf16.gmra.mrb[4].mxu1 %v1232_v54 }
  0x32   :  { %1101 = vmatmul.mubr.bf16.gmra.mrb[8].mxu0 %v72_v48  ;;  %1182 = vmatpush3.bf16.msra.mxu1 %v1224_v41 }
  0x33   :  { %1104 = vmatprep.mubr.bf16.mxu0 %v73_v49  ;;  %1149 = vmatpush3.bf16.msra.mxu0 %v1229_v47 }
  0x34   :  { %1150 = vmatprep.subr.bf16.mxu0 %v1231_v52  ;;  %1175 = vmatprep.subr.bf16.mxu1 %v1227_v45 }
  0x35   :  { %1132 = vmatprep.mubr.bf16.mxu1 %v1235_v57 }
  0x36   :  { %1183 = vmatpush3.bf16.msra.mxu1 %v1227_v45 }
  0x37   :  { %1151 = vmatpush3.bf16.msra.mxu0 %v1231_v52  ;;  %1176 = vmatprep.subr.bf16.mxu1 %v1229_v47 }
  0x38   :  { %1152 = vmatprep.subr.bf16.mxu0 %v1233_v55 }
  0x39   :  { %1133 = vmatmul.mubr.bf16.gmra.mrb[8].mxu1 %v1236_v58 }
  0x3a   :  { %1105 = vmatmul.mubr.bf16.gmra.mrb[12].mxu0 %v74_v53  ;;  %1184 = vmatpush3.bf16.msra.mxu1 %v1229_v47 }
  0x3b   :  { %1177 = vmatprep.subr.bf16.mxu1 %v1231_v52  ;;  %1153 = vmatpush3.bf16.msra.mxu0 %v1233_v55 }
  0x3c   :  { %1154 = vmatprep.subr.bf16.mxu0 %v1234_v56  ;;  %1136 = vmatprep.mubr.bf16.mxu1 %v1237_v59 }
  0x3e   :  { %1185 = vmatpush3.bf16.msra.mxu1 %v1231_v52 }
  0x3f   :  { %1178 = vmatprep.subr.bf16.mxu1 %v1233_v55  ;;  %1155 = vmatpush3.bf16.msra.mxu0 %v1234_v56 }
  0x41   :  { %1137 = vmatmul.mubr.bf16.gmra.mrb[12].mxu1 %v1238_v60 }
  0x42   :  { %1186 = vmatpush3.bf16.msra.mxu1 %v1233_v55 }
  0x43   :  { %1179 = vmatprep.subr.bf16.mxu1 %v1234_v56 }
  0x46   :  { %1187 = vmatpush3.bf16.msra.mxu1 %v1234_v56 }
  0x82   :  { %v316_v61 = vpop.permute.xlu1 %315 }
  0x83   :  { %v306_v62 = vpop.permute.xlu0 %305 }
  0x86   :  { %v321_v63 = vpop.permute.xlu1 %320 }
  0x87   :  { %v311_v0 = vpop.permute.xlu0 %310 }
  0x8a   :  { %v351_v1 = vpop.permute.xlu1 %350 }
  0x8b   :  { %v346_v2 = vpop.permute.xlu0 %345 }
  0x8e   :  { %v361_v3 = vpop.permute.xlu1 %360 }
  0x8f   :  { %v356_v4 = vpop.permute.xlu0 %355 }
  0x92   :  { %v331_v8 = vpop.permute.xlu1 %330 }
  0x93   :  { %v326_v12 = vpop.permute.xlu0 %325 }
  0x96   :  { %v341_v18 = vpop.permute.xlu1 %340 }
  0x97   :  { %v336_v20 = vpop.permute.xlu0 %335 }
  0x9a   :  { %v371_v29 = vpop.permute.xlu1 %370 }
  0x9b   :  { %v366_v30 = vpop.permute.xlu0 %365 }
  0x9e   :  { %v381_v45 = vpop.permute.xlu1 %380 }
  0x9f   :  { %v376_v46 = vpop.permute.xlu0 %375 }
  0xf5   :  { %v1094_v5 = vpop.f32.mrb[0].mxu0 }
  0xf6   :  { %v173_v6 = vpop.f32.mrb[1].mxu0  ;;  %v385_v9 = vmul.f32 %v1094_v5, %v316_v61 }
  0xf7   :  { %v1095_v7 = vpop.f32.mrb[2].mxu0  ;;  %v383_v13 = vmul.f32 %v306_v62, %v173_v6  ;;  %v1443_v62 = vld [vmem:[%s1491_s6] ss:$0 sm:$0xff] }
  0xf8   :  { %v386_v10 = vmul.f32 %v1095_v7, %v321_v63  ;;  %v176_v11 = vpop.f32.mrb[3].mxu0 }
  0xf9   :  { %v384_v14 = vmul.f32 %v311_v0, %v176_v11 }
  0xfa   :  { %v400_v15 = vpack.c.bf16 %v386_v10, %v385_v9 }
  0xfb   :  { %v399_v16 = vpack.c.bf16 %v384_v14, %v383_v13 }
  0xfc   :  { %v1126_v33 = vpop.f32.mrb[0].mxu1 }
  0xfd   :  { %v1098_v17 = vpop.f32.mrb[4].mxu0  ;;  %1156 = vmatprep.mubr.bf16.mxu0 %v399_v16  ;;  %v585_v35 = vpop.f32.mrb[1].mxu1 }
  0xfe   :  { %v189_v19 = vpop.f32.mrb[5].mxu0  ;;  %1157 = vmatmul.mubr.bf16.vlgmr.msra.gmra.mrb[16].mxu0 %v400_v15  ;;  %v389_v22 = vmul.f32 %v1098_v17, %v336_v20  ;;  %v1127_v39 = vpop.f32.mrb[2].mxu1 }
  0xff   :  { %v1099_v21 = vpop.f32.mrb[6].mxu0  ;;  %v387_v25 = vmul.f32 %v326_v12, %v189_v19  ;;  %v588_v42 = vpop.f32.mrb[3].mxu1 }
 0x100   :  { %v390_v23 = vmul.f32 %v1099_v21, %v341_v18  ;;  %v192_v24 = vpop.f32.mrb[7].mxu0 }
 0x101   :  { %v388_v26 = vmul.f32 %v331_v8, %v192_v24 }
 0x102   :  { %v402_v27 = vpack.c.bf16 %v390_v23, %v389_v22 }
 0x103   :  { %v401_v28 = vpack.c.bf16 %v388_v26, %v387_v25 }
 0x104   :  { %v1130_v49 = vpop.f32.mrb[4].mxu1 }
 0x105   :  { %v1102_v31 = vpop.f32.mrb[8].mxu0  ;;  %1160 = vmatprep.mubr.bf16.mxu0 %v401_v28  ;;  %v601_v51 = vpop.f32.mrb[5].mxu1 }
 0x106   :  { %v205_v32 = vpop.f32.mrb[9].mxu0  ;;  %1161 = vmatmul.mubr.bf16.gmra.mrb[20].mxu0 %v402_v27  ;;  %v393_v36 = vmul.f32 %v1102_v31, %v356_v4  ;;  %v1131_v55 = vpop.f32.mrb[6].mxu1 }
 0x107   :  { %v1103_v34 = vpop.f32.mrb[10].mxu0  ;;  %v391_v40 = vmul.f32 %v346_v2, %v205_v32  ;;  %v604_v58 = vpop.f32.mrb[7].mxu1 }
 0x108   :  { %v394_v37 = vmul.f32 %v1103_v34, %v361_v3  ;;  %v208_v38 = vpop.f32.mrb[11].mxu0 }
 0x109   :  { %v392_v41 = vmul.f32 %v351_v1, %v208_v38 }
 0x10a   :  { %v404_v43 = vpack.c.bf16 %v394_v37, %v393_v36 }
 0x10b   :  { %v403_v44 = vpack.c.bf16 %v392_v41, %v391_v40 }
 0x10d   :  { %v1106_v47 = vpop.f32.mrb[12].mxu0  ;;  %1164 = vmatprep.mubr.bf16.mxu1 %v403_v44 }
 0x10e   :  { %v221_v48 = vpop.f32.mrb[13].mxu0  ;;  %1165 = vmatmul.mubr.bf16.vlgmr.msra.gmra.mrb[8].mxu1 %v404_v43  ;;  %v397_v52 = vmul.f32 %v1106_v47, %v376_v46 }
 0x10f   :  { %v1107_v50 = vpop.f32.mrb[14].mxu0  ;;  %v395_v56 = vmul.f32 %v366_v30, %v221_v48 }
 0x110   :  { %v398_v53 = vmul.f32 %v1107_v50, %v381_v45  ;;  %v224_v54 = vpop.f32.mrb[15].mxu0 }
 0x111   :  { %v396_v57 = vmul.f32 %v371_v29, %v224_v54 }
 0x112   :  { %v406_v59 = vpack.c.bf16 %v398_v53, %v397_v52 }
 0x113   :  { %v405_v60 = vpack.c.bf16 %v396_v57, %v395_v56 }
 0x115   :  { %1168 = vmatprep.mubr.bf16.mxu1 %v405_v60 }
 0x116   :  { %1169 = vmatmul.mubr.bf16.gmra.mrb[12].mxu1 %v406_v59 }
 0x1d1   :  { %v1158_v61 = vpop.f32.mrb[16].mxu0 }
 0x1d2   :  { %v739_v63 = vadd.f32 %v1158_v61, %v1126_v33  ;;  %v730_v0 = vpop.f32.mrb[17].mxu0 }
 0x1d3   :  { %v731_v1 = vadd.f32 %v730_v0, %v585_v35  ;;  %v1159_v2 = vpop.f32.mrb[18].mxu0 }
 0x1d4   :  { %v802_v3 = vadd.f32 %v1443_v62, %v739_v63  ;;  %v742_v4 = vadd.f32 %v1159_v2, %v1127_v39  ;;  %v733_v5 = vpop.f32.mrb[19].mxu0 }
 0x1d5   :  { %v800_v6 = vadd.f32 %v1443_v62, %v731_v1  ;;  %v734_v7 = vadd.f32 %v733_v5, %v588_v42 }
 0x1d6   :  { %v803_v8 = vadd.f32 %v1443_v62, %v742_v4  ;;  %v818_v10 = vmax.f32 %v802_v3, 0.0 }
 0x1d7   :  { %v801_v9 = vadd.f32 %v1443_v62, %v734_v7  ;;  %v816_v12 = vmax.f32 %v800_v6, 0.0 }
 0x1d8   :  { %v819_v11 = vmax.f32 %v803_v8, 0.0 }
 0x1d9   :  { %v817_v13 = vmax.f32 %v801_v9, 0.0  ;;  %v1162_v14 = vpop.f32.mrb[20].mxu0 }
 0x1da   :  { %v989_v15 = vpack.c.bf16 %v819_v11, %v818_v10  ;;  %v755_v16 = vadd.f32 %v1162_v14, %v1130_v49  ;;  %v746_v17 = vpop.f32.mrb[21].mxu0 }
 0x1db   :  { %v984_v18 = vpack.c.bf16 %v817_v13, %v816_v12  ;;  %v747_v19 = vadd.f32 %v746_v17, %v601_v51  ;;  %v1163_v20 = vpop.f32.mrb[22].mxu0 }
 0x1dc   :  { %1021 = vst [vmem:[%s1492_s7 + $0x8] sm:$0xff] %v989_v15   ;;  %v806_v21 = vadd.f32 %v1443_v62, %v755_v16  ;;  %v758_v22 = vadd.f32 %v1163_v20, %v1131_v55  ;;  %v749_v23 = vpop.f32.mrb[23].mxu0 }
 0x1dd   :  { %985 = vst [vmem:[%s1492_s7] sm:$0xff] %v984_v18   ;;  %v804_v24 = vadd.f32 %v1443_v62, %v747_v19  ;;  %v750_v25 = vadd.f32 %v749_v23, %v604_v58 }
 0x1de   :  { %v807_v26 = vadd.f32 %v1443_v62, %v758_v22  ;;  %v822_v28 = vmax.f32 %v806_v21, 0.0 }
 0x1df   :  { %v805_v27 = vadd.f32 %v1443_v62, %v750_v25  ;;  %v820_v30 = vmax.f32 %v804_v24, 0.0 }
 0x1e0   :  { %v823_v29 = vmax.f32 %v807_v26, 0.0 }
 0x1e1   :  { %v821_v31 = vmax.f32 %v805_v27, 0.0  ;;  %v1166_v32 = vpop.f32.mrb[8].mxu1 }
 0x1e2   :  { %v999_v33 = vpack.c.bf16 %v823_v29, %v822_v28  ;;  %v810_v34 = vadd.f32 %v1166_v32, %v1443_v62  ;;  %v762_v35 = vpop.f32.mrb[9].mxu1 }
 0x1e3   :  { %v994_v36 = vpack.c.bf16 %v821_v31, %v820_v30  ;;  %v808_v37 = vadd.f32 %v1443_v62, %v762_v35  ;;  %v1167_v38 = vpop.f32.mrb[10].mxu1 }
 0x1e4   :  { %1023 = vst [vmem:[%s1492_s7 + $0x18] sm:$0xff] %v999_v33   ;;  %v811_v39 = vadd.f32 %v1167_v38, %v1443_v62  ;;  %v765_v40 = vpop.f32.mrb[11].mxu1  ;;  %v826_v42 = vmax.f32 %v810_v34, 0.0 }
 0x1e5   :  { %1022 = vst [vmem:[%s1492_s7 + $0x10] sm:$0xff] %v994_v36   ;;  %v809_v41 = vadd.f32 %v1443_v62, %v765_v40  ;;  %v824_v44 = vmax.f32 %v808_v37, 0.0 }
 0x1e6   :  { %v827_v43 = vmax.f32 %v811_v39, 0.0 }
 0x1e7   :  { %v825_v45 = vmax.f32 %v809_v41, 0.0 }
 0x1e8   :  { %v1009_v46 = vpack.c.bf16 %v827_v43, %v826_v42 }
 0x1e9   :  { %v1004_v47 = vpack.c.bf16 %v825_v45, %v824_v44  ;;  %v1170_v48 = vpop.f32.mrb[12].mxu1 }
 0x1ea   :  { %1025 = vst [vmem:[%s1492_s7 + $0x28] sm:$0xff] %v1009_v46   ;;  %v814_v49 = vadd.f32 %v1170_v48, %v1443_v62  ;;  %v778_v50 = vpop.f32.mrb[13].mxu1 }
 0x1eb   :  { %1024 = vst [vmem:[%s1492_s7 + $0x20] sm:$0xff] %v1004_v47   ;;  %v812_v51 = vadd.f32 %v1443_v62, %v778_v50  ;;  %v1171_v52 = vpop.f32.mrb[14].mxu1 }
 0x1ec   :  { %v815_v53 = vadd.f32 %v1171_v52, %v1443_v62  ;;  %v781_v54 = vpop.f32.mrb[15].mxu1  ;;  %v830_v56 = vmax.f32 %v814_v49, 0.0 }
 0x1ed   :  { %v813_v55 = vadd.f32 %v1443_v62, %v781_v54  ;;  %v828_v58 = vmax.f32 %v812_v51, 0.0 }
 0x1ee   :  { %v831_v57 = vmax.f32 %v815_v53, 0.0 }
 0x1ef   :  { %v829_v59 = vmax.f32 %v813_v55, 0.0 }
 0x1f0   :  { %v1019_v60 = vpack.c.bf16 %v831_v57, %v830_v56 }
 0x1f1   :  { %v1014_v61 = vpack.c.bf16 %v829_v59, %v828_v58 }
 0x1f2   :  { %1027 = vst [vmem:[%s1492_s7 + $0x38] sm:$0xff] %v1019_v60  }
 0x1f3   :  { %1026 = vst [vmem:[%s1492_s7 + $0x30] sm:$0xff] %v1014_v61  }

</bundles_post_ra>
